<compile_context>
chip_gen: v5e
topology: v5e:2x2
jax: 0.10.0
libtpu: 0.0.40
codegen_flags: <defaults>
</compile_context>

<pallas_src>
import functools

import jax
import jax.numpy as jnp
from jax.experimental import pallas as pl
from jax.experimental.pallas import tpu as pltpu

HIDDEN = 64


def value_net_kernel(x_ref, w1_ref, b1_ref, w2_ref, b2_ref, w3_ref, b3_ref,
                     o_ref, *, mxu_dtype):
    # One batch tile (TB, D); weights/biases are VMEM-resident across all grid
    # steps (constant index_maps).  MXU operands in mxu_dtype, accumulate f32,
    # bias/ReLU on the VPU in f32.
    x = x_ref[...].astype(mxu_dtype)

    # fc1 + ReLU
    h1 = jnp.dot(x, w1_ref[...], preferred_element_type=jnp.float32)
    h1 = jnp.maximum(h1 + b1_ref[...], 0.0)                     # (TB, 64) f32

    # fc2 + ReLU
    h2 = jnp.dot(h1.astype(mxu_dtype), w2_ref[...],
                 preferred_element_type=jnp.float32)
    h2 = jnp.maximum(h2 + b2_ref[...], 0.0)                     # (TB, 64) f32

    # fc3 (64 -> 1): N=1 MXU matmul against the (64, 1) column.
    out = jnp.dot(h2.astype(mxu_dtype), w3_ref[...],
                  preferred_element_type=jnp.float32) + b3_ref[...]   # (TB, 1)
    o_ref[...] = out.astype(o_ref.dtype)


def prepare_params(params, compute_dtype=jnp.bfloat16):
    """One-time prep (hoisted out of the forward): transpose PyTorch (out,in)
    weights so the kernel computes x @ W; fc3 kept as a (64,1) column; biases f32.
    compute_dtype is the MXU operand dtype (bf16 default; pass jnp.float32 for an
    exact path)."""
    return dict(
        w1=jnp.asarray(params["fc1_w"]).T.astype(compute_dtype),        # (D, 64)
        b1=jnp.asarray(params["fc1_b"])[None, :].astype(jnp.float32),   # (1, 64)
        w2=jnp.asarray(params["fc2_w"]).T.astype(compute_dtype),        # (64, 64)
        b2=jnp.asarray(params["fc2_b"])[None, :].astype(jnp.float32),   # (1, 64)
        w3=jnp.asarray(params["fc3_w"]).T.astype(compute_dtype),        # (64, 1) col
        b3=jnp.asarray(params["fc3_b"])[None, :].astype(jnp.float32),   # (1, 1)
    )


def _choose_batch_tile(B, D, block_b):
    """Static (trace-time) batch-tile selection, VMEM-budget aware."""
    # Per-row VMEM bytes: double-buffered f32 x tile (2*4*D), double-buffered
    # lane-padded (.,1) f32 output tile (2*4*128), generous allowance for
    # f32/bf16 intermediates (h1, h2, operand casts).
    per_row = 2 * 4 * D + 2 * 4 * 128 + 8 * HIDDEN * 4
    vmem_budget = 24 * 1024 * 1024          # conservative even on v7x (64 MiB)
    cap = max(8, (vmem_budget // per_row) // 8 * 8)

    tb = max(8, min(block_b, cap) // 8 * 8)
    # Keep >=2 grid steps for non-tiny batches (v7x megacore sharding).
    if B >= 16:
        half = max(8, pl.cdiv(pl.cdiv(B, 2), 8) * 8)
        tb = min(tb, half)
    # Never exceed the sublane-rounded batch itself.
    tb = min(tb, max(8, pl.cdiv(B, 8) * 8))
    return tb


@functools.partial(jax.jit, static_argnames=("block_b",))
def value_network_forward(x, prep, block_b=4096):
    """x: (B, input_dim), any float dtype. prep: output of prepare_params.
    Returns (B, 1) f32."""
    B, D = x.shape
    mxu_dtype = prep["w1"].dtype            # static at trace time
    tb = _choose_batch_tile(B, D, block_b)

    resident = lambda shape: pl.BlockSpec(shape, lambda i: (0, 0))

    out = pl.pallas_call(
        functools.partial(value_net_kernel, mxu_dtype=mxu_dtype),
        out_shape=jax.ShapeDtypeStruct((B, 1), jnp.float32),
        grid=(pl.cdiv(B, tb),),             # ragged tail handled by Pallas
        in_specs=[
            pl.BlockSpec((tb, D), lambda i: (i, 0)),   # x streamed per batch tile
            resident(prep["w1"].shape), resident(prep["b1"].shape),
            resident(prep["w2"].shape), resident(prep["b2"].shape),
            resident(prep["w3"].shape), resident(prep["b3"].shape),
        ],
        out_specs=pl.BlockSpec((tb, 1), lambda i: (i, 0)),
        compiler_params=pltpu.CompilerParams(
            dimension_semantics=("parallel",),         # megacore sharding on v7x
            vmem_limit_bytes=48 * 1024 * 1024,
        ),
    )(x, prep["w1"], prep["b1"], prep["w2"], prep["b2"], prep["w3"], prep["b3"])

    return out


def init_params(input_dim, key):
    """Deterministic synthetic params with PyTorch Linear shapes (out, in)."""
    ks = jax.random.split(key, 6)

    def lin(kw, kb, fan_in, fan_out):
        bound = 1.0 / jnp.sqrt(fan_in)
        w = jax.random.uniform(kw, (fan_out, fan_in), jnp.float32, -bound, bound)
        b = jax.random.uniform(kb, (fan_out,), jnp.float32, -bound, bound)
        return w, b

    fc1_w, fc1_b = lin(ks[0], ks[1], input_dim, HIDDEN)
    fc2_w, fc2_b = lin(ks[2], ks[3], HIDDEN, HIDDEN)
    fc3_w, fc3_b = lin(ks[4], ks[5], HIDDEN, 1)
    return dict(fc1_w=fc1_w, fc1_b=fc1_b,
                fc2_w=fc2_w, fc2_b=fc2_b,
                fc3_w=fc3_w, fc3_b=fc3_b)


def value_network_ref(x, p):
    h1 = jnp.maximum(x @ p["fc1_w"].T + p["fc1_b"], 0.0)
    h2 = jnp.maximum(h1 @ p["fc2_w"].T + p["fc2_b"], 0.0)
    return h2 @ p["fc3_w"].T + p["fc3_b"]


if __name__ == "__main__":
    key = jax.random.PRNGKey(0)
    k_x, k_x2, k_p = jax.random.split(key, 3)

    input_dim = 32
    params = init_params(input_dim, k_p)

    x_small = jax.random.normal(k_x, (8, input_dim), dtype=jnp.float32)
    x_big = jax.random.normal(k_x2, (1000, input_dim), dtype=jnp.float32)
    ref_small = value_network_ref(x_small, params)
    ref_big = value_network_ref(x_big, params)

    # Exact f32 path: tight validation of kernel semantics, single grid step.
    prep_f32 = prepare_params(params, jnp.float32)
    out_small = jax.block_until_ready(value_network_forward(x_small, prep_f32))
    assert out_small.shape == (8, 1), out_small.shape
    assert jnp.allclose(out_small, ref_small, atol=1e-5, rtol=1e-5), "f32 small mismatch"

    # Ragged batch (B % tb != 0), >=2 grid steps, no wrapper-side pad/slice.
    out_big = jax.block_until_ready(value_network_forward(x_big, prep_f32))
    assert out_big.shape == (1000, 1), out_big.shape
    assert jnp.allclose(out_big, ref_big, atol=1e-5, rtol=1e-5), "f32 ragged mismatch"

    # Default bf16-operand path (f32 accumulate / bias / ReLU); relaxed tolerance.
    prep_bf16 = prepare_params(params)      # compute_dtype=jnp.bfloat16
    out_bf16 = jax.block_until_ready(value_network_forward(x_big, prep_bf16))
    assert out_bf16.shape == (1000, 1), out_bf16.shape
    assert jnp.allclose(out_bf16, ref_big, atol=5e-2, rtol=5e-2), "bf16 ragged mismatch"

    print("KERNEL_OK")
</pallas_src>

<mosaic_0001>
module attributes {stable_mosaic.version = 11 : i64} {
  func.func @value_net_kernel(%arg0: i32, %arg1: memref<8x32xf32, #tpu.memory_space<vmem>>, %arg2: memref<32x64xf32, #tpu.memory_space<vmem>>, %arg3: memref<1x64xf32, #tpu.memory_space<vmem>>, %arg4: memref<64x64xf32, #tpu.memory_space<vmem>>, %arg5: memref<1x64xf32, #tpu.memory_space<vmem>>, %arg6: memref<64x1xf32, #tpu.memory_space<vmem>>, %arg7: memref<1x1xf32, #tpu.memory_space<vmem>>, %arg8: memref<8x1xf32, #tpu.memory_space<vmem>>) attributes {dimension_semantics = [#tpu.dimension_semantics<parallel>], iteration_bounds = array<i64: 1>, scalar_prefetch = 0 : i64, scratch_operands = 0 : i64, tpu.core_type = #tpu.core_type<tc>, window_params = [{transform_indices = @transform_0, window_bounds = array<i64: 8, 32>}, {pipeline_mode = #tpu.pipeline_mode<synchronous>, transform_indices = @transform_1, window_bounds = array<i64: 32, 64>}, {pipeline_mode = #tpu.pipeline_mode<synchronous>, transform_indices = @transform_2, window_bounds = array<i64: 1, 64>}, {pipeline_mode = #tpu.pipeline_mode<synchronous>, transform_indices = @transform_3, window_bounds = array<i64: 64, 64>}, {pipeline_mode = #tpu.pipeline_mode<synchronous>, transform_indices = @transform_4, window_bounds = array<i64: 1, 64>}, {pipeline_mode = #tpu.pipeline_mode<synchronous>, transform_indices = @transform_5, window_bounds = array<i64: 64, 1>}, {pipeline_mode = #tpu.pipeline_mode<synchronous>, transform_indices = @transform_6, window_bounds = array<i64: 1, 1>}, {transform_indices = @transform_7, window_bounds = array<i64: 8, 1>}]} {
    %c0 = arith.constant 0 : index
    %c0_0 = arith.constant 0 : index
    %0 = vector.load %arg1[%c0, %c0_0] : memref<8x32xf32, #tpu.memory_space<vmem>>, vector<8x32xf32>
    %c0_1 = arith.constant 0 : index
    %c0_2 = arith.constant 0 : index
    %1 = vector.load %arg2[%c0_1, %c0_2] : memref<32x64xf32, #tpu.memory_space<vmem>>, vector<32x64xf32>
    %cst = arith.constant dense<0.000000e+00> : vector<8x64xf32>
    %2 = tpu.matmul %0, %1, %cst {dimension_numbers = #tpu.dot_dimension_numbers<[1], [0], [0], [1], [0, 0, 1, 1], [], []>} : vector<8x32xf32>, vector<32x64xf32>, vector<8x64xf32> -> vector<8x64xf32>
    %c0_3 = arith.constant 0 : index
    %c0_4 = arith.constant 0 : index
    %3 = vector.load %arg3[%c0_3, %c0_4] : memref<1x64xf32, #tpu.memory_space<vmem>>, vector<1x64xf32>
    %4 = vector.broadcast %3 : vector<1x64xf32> to vector<8x64xf32>
    %5 = arith.addf %2, %4 : vector<8x64xf32>
    %cst_5 = arith.constant 0.000000e+00 : f32
    %6 = vector.broadcast %cst_5 : f32 to vector<8x64xf32>
    %7 = arith.maximumf %5, %6 : vector<8x64xf32>
    %c0_6 = arith.constant 0 : index
    %c0_7 = arith.constant 0 : index
    %8 = vector.load %arg4[%c0_6, %c0_7] : memref<64x64xf32, #tpu.memory_space<vmem>>, vector<64x64xf32>
    %cst_8 = arith.constant dense<0.000000e+00> : vector<8x64xf32>
    %9 = tpu.matmul %7, %8, %cst_8 {dimension_numbers = #tpu.dot_dimension_numbers<[1], [0], [0], [1], [0, 0, 1, 1], [], []>} : vector<8x64xf32>, vector<64x64xf32>, vector<8x64xf32> -> vector<8x64xf32>
    %c0_9 = arith.constant 0 : index
    %c0_10 = arith.constant 0 : index
    %10 = vector.load %arg5[%c0_9, %c0_10] : memref<1x64xf32, #tpu.memory_space<vmem>>, vector<1x64xf32>
    %11 = vector.broadcast %10 : vector<1x64xf32> to vector<8x64xf32>
    %12 = arith.addf %9, %11 : vector<8x64xf32>
    %cst_11 = arith.constant 0.000000e+00 : f32
    %13 = vector.broadcast %cst_11 : f32 to vector<8x64xf32>
    %14 = arith.maximumf %12, %13 : vector<8x64xf32>
    %c0_12 = arith.constant 0 : index
    %c0_13 = arith.constant 0 : index
    %15 = vector.load %arg6[%c0_12, %c0_13] : memref<64x1xf32, #tpu.memory_space<vmem>>, vector<64x1xf32>
    %cst_14 = arith.constant dense<0.000000e+00> : vector<8x1xf32>
    %16 = tpu.matmul %14, %15, %cst_14 {dimension_numbers = #tpu.dot_dimension_numbers<[1], [0], [0], [1], [0, 0, 1, 1], [], []>} : vector<8x64xf32>, vector<64x1xf32>, vector<8x1xf32> -> vector<8x1xf32>
    %c0_15 = arith.constant 0 : index
    %c0_16 = arith.constant 0 : index
    %17 = vector.load %arg7[%c0_15, %c0_16] : memref<1x1xf32, #tpu.memory_space<vmem>>, vector<1x1xf32>
    %18 = vector.broadcast %17 : vector<1x1xf32> to vector<8x1xf32>
    %19 = arith.addf %16, %18 : vector<8x1xf32>
    %c0_17 = arith.constant 0 : index
    %c0_18 = arith.constant 0 : index
    %20 = vector.load %arg8[%c0_17, %c0_18] : memref<8x1xf32, #tpu.memory_space<vmem>>, vector<8x1xf32>
    tpu.vector_store %arg8[%c0_17, %c0_18], %19 {strides = array<i32>} : memref<8x1xf32, #tpu.memory_space<vmem>>, vector<8x1xf32>,
    return
  }
  func.func @transform_0(%arg0: i32) -> (i32, i32) {
    %c0_i32 = arith.constant 0 : i32
    %c0_i32_0 = arith.constant 0 : i32
    return %arg0, %c0_i32 : i32, i32
  }
  func.func @transform_1(%arg0: i32) -> (i32, i32) {
    %c0_i32 = arith.constant 0 : i32
    %c0_i32_0 = arith.constant 0 : i32
    %c0_i32_1 = arith.constant 0 : i32
    return %c0_i32, %c0_i32_0 : i32, i32
  }
  func.func @transform_2(%arg0: i32) -> (i32, i32) {
    %c0_i32 = arith.constant 0 : i32
    %c0_i32_0 = arith.constant 0 : i32
    %c0_i32_1 = arith.constant 0 : i32
    return %c0_i32, %c0_i32_0 : i32, i32
  }
  func.func @transform_3(%arg0: i32) -> (i32, i32) {
    %c0_i32 = arith.constant 0 : i32
    %c0_i32_0 = arith.constant 0 : i32
    %c0_i32_1 = arith.constant 0 : i32
    return %c0_i32, %c0_i32_0 : i32, i32
  }
  func.func @transform_4(%arg0: i32) -> (i32, i32) {
    %c0_i32 = arith.constant 0 : i32
    %c0_i32_0 = arith.constant 0 : i32
    %c0_i32_1 = arith.constant 0 : i32
    return %c0_i32, %c0_i32_0 : i32, i32
  }
  func.func @transform_5(%arg0: i32) -> (i32, i32) {
    %c0_i32 = arith.constant 0 : i32
    %c0_i32_0 = arith.constant 0 : i32
    %c0_i32_1 = arith.constant 0 : i32
    return %c0_i32, %c0_i32_0 : i32, i32
  }
  func.func @transform_6(%arg0: i32) -> (i32, i32) {
    %c0_i32 = arith.constant 0 : i32
    %c0_i32_0 = arith.constant 0 : i32
    %c0_i32_1 = arith.constant 0 : i32
    return %c0_i32, %c0_i32_0 : i32, i32
  }
  func.func @transform_7(%arg0: i32) -> (i32, i32) {
    %c0_i32 = arith.constant 0 : i32
    %c0_i32_0 = arith.constant 0 : i32
    return %arg0, %c0_i32 : i32, i32
  }
}

</mosaic_0001>

<bundles_post_ra>
// kernel: value_network_forward.1
= control target key start
LH: loop header
LB: loop body
LE: loop exit
PB: predicated region body
PF: predicated region fallthrough
CT: control target
= control target key end

     0   :  { %s344_s0 = inlined_call_operand.hbm [shape: f32[8,32], index: 0, kind: input, shape index: {}]   ;;  %s345_s1 = inlined_call_operand.hbm [shape: f32[32,64], index: 1, kind: input, shape index: {}]   ;;  %s346_s2 = inlined_call_operand.vmem [shape: f32[1,64], index: 2, kind: input, shape index: {}]   ;;  %s347_s3 = inlined_call_operand.vmem [shape: f32[64,64], index: 3, kind: input, shape index: {}]   ;;  %s348_s4 = inlined_call_operand.vmem [shape: f32[1,64], index: 4, kind: input, shape index: {}]   ;;  %s349_s5 = inlined_call_operand.vmem [shape: f32[64,1], index: 5, kind: input, shape index: {}]   ;;  %s350_s6 = inlined_call_operand.<no memory space> [shape: f32[1,1], index: 6, kind: input, shape index: {}]   ;;  %s351_s7 = inlined_call_operand.vmem [shape: f32[8,1], index: 7, kind: output, shape index: {}]  }
   0x1   :  { %v12_v0 = vstv %s350_s6 }
   0x2   :  { %13 = vst [vmem:[#allocation2] sm:$0x1] %v12_v0 }
   0x3   :  { %14 = vsyncpa [#allocation4], 0  ;;  %s21_s28 = sshll.u32 %s344_s0, 4  ;;  %s22_s28 = int_to_ptr.hbm [resolvable:$true] %s21_s28 }
   0x4   :  { %15 = vsyncpa [#allocation6], 0  ;;  %s234_s29 = smov [#allocation3]   ;;  %s31_s10 = sshll.u32 %s345_s1, 4  ;;  %s32_s10 = int_to_ptr.hbm [resolvable:$true] %s31_s10 }
   0x5   :  { %s23_s30 = sshll.u32 %s234_s29, 4  ;;  %s235_s11 = smov [#allocation5]   ;;  %s24_s30 = int_to_ptr.vmem [resolvable:$true] %s23_s30 }
   0x6   :  { %26 = dma.hbm_to_vmem [thread:$0]  %s22_s28, 128, %s24_s30, [#allocation4]  }
   0x7   :  { %s33_s12 = sshll.u32 %s235_s11, 4  ;;  %s236_s6 = smov 128   ;;  %s34_s12 = int_to_ptr.vmem [resolvable:$true] %s33_s12 }
   0x8   :  { %s237_s13 = smov 8  }
   0x9   :  { %39 = dma.hbm_to_vmem [thread:$0]  %s32_s10, 512, %s34_s12, [#allocation6], %s236_s6, %s236_s6, %s237_s13  }
   0xa   :  { %230 = dma.done.wait [#allocation4], 128  }
   0xb   :  { %231 = vsyncadd [#allocation4], 4294967168 }
   0xc   :  { %232 = dma.done.wait [#allocation6], 512  }
   0xd   :  { %233 = vsyncadd [#allocation6], 4294966784  ;;  %v62_v1 = vld [vmem:[#allocation5 + $0x18] sm:$0xff]  ;;  %v61_v2 = vld [vmem:[#allocation5 + $0x10] sm:$0xff]  ;;  %vm67_vm0 = vcmask 261120   ;;  %vm104_vm1 = vcmask 523264  }
   0xe   :  { %83 = vmatpush.msra.mxu0 %v62_v1  ;;  %v99_v3 = vld [vmem:[%s347_s3 + $0x38] sm:$0xff]  ;;  %v98_v5 = vld [vmem:[%s347_s3 + $0x30] sm:$0xff]  ;;  %v97_v6 = vld [vmem:[%s347_s3 + $0x28] sm:$0xff]  ;;  %vm164_vm2 = vcmask 7168  }
   0xf   :  { %v60_v4 = vld [vmem:[#allocation5 + $0x8] sm:$0xff]  ;;  %116 = vmatpush.msra.mxu1 %v99_v3  ;;  %v59_v7 = vld [vmem:[#allocation5] sm:$0xff]  ;;  %v58_v8 = vld [vmem:[#allocation3] sm:$0xff] }
  0x10   :  { %84 = vmatpush.msra.mxu0 %v61_v2  ;;  %v96_v9 = vld [vmem:[%s347_s3 + $0x20] sm:$0xff]  ;;  %v95_v10 = vld [vmem:[%s347_s3 + $0x18] sm:$0xff]  ;;  %v94_v11 = vld [vmem:[%s347_s3 + $0x10] sm:$0xff] }
  0x11   :  { %117 = vmatpush.msra.mxu1 %v98_v5  ;;  %v93_v12 = vld [vmem:[%s347_s3 + $0x8] sm:$0xff]  ;;  %v92_v13 = vld [vmem:[%s347_s3] sm:$0xff]  ;;  %v136_v14 = vld [vmem:[%s349_s5 + $0x38] sm:$0xff] }
  0x12   :  { %85 = vmatpush.msra.mxu0 %v60_v4  ;;  %v135_v15 = vld [vmem:[%s349_s5 + $0x30] sm:$0xff]  ;;  %152 = vmatpush.msra.mxu2 %v136_v14  ;;  %v134_v16 = vld [vmem:[%s349_s5 + $0x28] sm:$0xff]  ;;  %v133_v17 = vld [vmem:[%s349_s5 + $0x20] sm:$0xff] }
  0x13   :  { %118 = vmatpush.msra.mxu1 %v97_v6  ;;  %v132_v18 = vld [vmem:[%s349_s5 + $0x18] sm:$0xff]  ;;  %v179_v19 = vld [vmem:[%s346_s2] ss:$0 sm:$0xff]  ;;  %v131_v23 = vld [vmem:[%s349_s5 + $0x10] sm:$0xff] }
  0x14   :  { %86 = vmatpush.msra.mxu0 %v59_v7  ;;  %153 = vmatpush.msra.mxu2 %v135_v15  ;;  %v130_v24 = vld [vmem:[%s349_s5 + $0x8] sm:$0xff]  ;;  %v129_v25 = vld [vmem:[%s349_s5] sm:$0xff] }
  0x15   :  { %172 = vmatmul.msk.f32.vlgmr.msra.gmra.mxu0 %vm67_vm0, %v58_v8  ;;  %119 = vmatpush.msra.mxu1 %v96_v9  ;;  %v180_v26 = vld [vmem:[%s348_s4] ss:$0 sm:$0xff] }
  0x16   :  { %154 = vmatpush.msra.mxu2 %v134_v16  ;;  %v181_v30 = vld [vmem:[#allocation2] ss:$0 sm:$0xff] }
  0x17   :  { %120 = vmatpush.msra.mxu1 %v95_v10 }
  0x18   :  { %155 = vmatpush.msra.mxu2 %v133_v17 }
  0x19   :  { %121 = vmatpush.msra.mxu1 %v94_v11 }
  0x1a   :  { %156 = vmatpush.msra.mxu2 %v132_v18 }
  0x1b   :  { %122 = vmatpush.msra.mxu1 %v93_v12 }
  0x1c   :  { %157 = vmatpush.msra.mxu2 %v131_v23 }
  0x1d   :  { %123 = vmatpush.msra.mxu1 %v92_v13 }
  0x1e   :  { %158 = vmatpush.msra.mxu2 %v130_v24 }
  0x20   :  { %159 = vmatpush.msra.mxu2 %v129_v25 }
  0x92   :  { %v88_v20 = vpop.f32.mrf.mxu0 }
  0x93   :  { %v89_v21 = vadd.f32 %v179_v19, %v88_v20 }
  0x95   :  { %v91_v22 = vmax.f32 %v89_v21, 0.0 }
  0x97   :  { %173 = vmatmul.msk.f32.vlgmr.msra.gmra.mxu1 %vm104_vm1, %v91_v22 }
 0x114   :  { %v125_v27 = vpop.f32.mrf.mxu1 }
 0x115   :  { %v126_v28 = vadd.f32 %v180_v26, %v125_v27 }
 0x117   :  { %v128_v29 = vmax.f32 %v126_v28, 0.0 }
 0x119   :  { %174 = vmatmul.msk.f32.vlgmr.msra.gmra.mxu2 %vm104_vm1, %v128_v29 }
 0x19c   :  { %v161_v31 = vpop.f32.mrf.mxu2 }
 0x19d   :  { %v162_v32 = vadd.f32 %v181_v30, %v161_v31 }
 0x19f   :  { %165 = vst.msk [vmem:[%s351_s7] sm:$0xff] %vm164_vm2, %v162_v32 }
 0x1a0   :  { %170 = vsyncpa [#allocation4], 1 }
 0x1a1   :  { %171 = vsyncpa [#allocation6], 1 }

</bundles_post_ra>
